<compile_context>
chip_gen: v5e
topology: v5e:2x2
jax: 0.10.0
libtpu: 0.0.40
codegen_flags: <defaults>
</compile_context>

<pallas_src>
import math

import jax
import jax.numpy as jnp
from jax.experimental import pallas as pl
from jax.experimental.pallas import tpu as pltpu


def _round_up(x, m):
    return (x + m - 1) // m * m


_TARGET_BLOCK_BYTES = 4 << 20        # ~4 MiB per input block per grid step
_SUBLANE = {4: 8, 2: 16, 1: 32}      # sublane multiple per itemsize


def loss_psnr(im_true, im_fake, data_range=255.0):
    """Batch-mean PSNR matching PyTorch Loss_PSNR.forward.

    im_true, im_fake: (N, C, H, W).  Values are clamped to [0, 1], scaled by
    data_range, per-sample MSE over C*H*W is formed,
    psnr = 10*log10(data_range^2 / mse), and the batch mean is returned.
    data_range cancels exactly in the ratio, so the kernel only computes the
    per-sample sum((clip(t)-clip(f))^2); the wrapper finishes with
    10*log10(D / sum_sq).
    """
    del data_range  # cancels exactly; kept for API parity with the module
    N, C, H, W = im_true.shape
    D = C * H * W

    # Keep native dtype (bf16/int8 stream at native width); cast per-tile.
    t = im_true.reshape(N, D)
    f = im_fake.reshape(N, D)
    itemsize = t.dtype.itemsize
    sub = _SUBLANE.get(itemsize, 8)

    # ---- Generation-aware block budget -------------------------------------
    try:
        vmem_cap = int(pltpu.get_tpu_info().vmem_capacity_bytes)
    except Exception:  # info unavailable -> assume smallest (v7x: 64 MiB)
        vmem_cap = 64 << 20
    # 2 inputs x 2 pipeline buffers per block must fit comfortably in VMEM.
    per_block_bytes = min(_TARGET_BLOCK_BYTES, vmem_cap // 16)
    elems = max(per_block_bytes // itemsize, sub * 128)

    d_round = _round_up(D, 128)
    tile_d = min(d_round, 8192)
    bn = max(sub, min(_round_up(N, sub), (elems // tile_d) // sub * sub))
    if bn >= _round_up(N, sub):
        # Whole batch fits in one row-block: spend the rest of the budget on
        # a wider D tile.
        bn = _round_up(N, sub)
        tile_d = min(d_round, max(128, (elems // bn) // 128 * 128))

    nb = pl.cdiv(N, bn)              # batch blocks (partial last block OK)
    d_blocks = pl.cdiv(D, tile_d)    # real D tiles

    # v7x megacore: guarantee >=2 blocks on the parallel axes when possible.
    split = 2 if (nb == 1 and d_blocks >= 2) else 1
    dps = pl.cdiv(d_blocks, split)   # D tiles handled per split
    need_mask = (split * dps * tile_d) != D
    last_real_block = d_blocks - 1

    if split * dps == d_blocks:
        def d_block_idx(s, j):
            return s * dps + j
    else:
        # Logical tiles past the end are clamped to the last real tile; their
        # contribution is zeroed by the in-kernel lane mask.
        def d_block_idx(s, j):
            return jnp.minimum(s * dps + j, last_real_block)

    def in_map(s, i, j):
        return (i, d_block_idx(s, j))

    # ---- Kernel -------------------------------------------------------------
    def kernel(t_ref, f_ref, o_ref):
        s = pl.program_id(0)
        j = pl.program_id(2)

        @pl.when(j == 0)
        def _():
            o_ref[...] = jnp.zeros_like(o_ref)

        tt = jnp.clip(t_ref[...].astype(jnp.float32), 0.0, 1.0)
        ff = jnp.clip(f_ref[...].astype(jnp.float32), 0.0, 1.0)
        diff = tt - ff
        if need_mask:
            lane = jax.lax.broadcasted_iota(jnp.int32, diff.shape, 1)
            offset = (s * dps + j) * tile_d
            diff = jnp.where(lane + offset < D, diff, 0.0)
        o_ref[...] += jnp.sum(diff * diff, axis=-1, keepdims=True)

    cost = pl.CostEstimate(
        flops=7 * N * D,
        transcendentals=0,
        bytes_accessed=2 * N * D * itemsize + split * N * 4,
    )

    partial = pl.pallas_call(
        kernel,
        out_shape=jax.ShapeDtypeStruct((split, N, 1), jnp.float32),
        grid_spec=pltpu.PrefetchScalarGridSpec(
            num_scalar_prefetch=0,
            grid=(split, nb, dps),
            in_specs=[
                pl.BlockSpec((bn, tile_d), in_map),
                pl.BlockSpec((bn, tile_d), in_map),
            ],
            out_specs=pl.BlockSpec((None, bn, 1), lambda s, i, j: (s, i, 0)),
        ),
        compiler_params=pltpu.CompilerParams(
            dimension_semantics=("parallel", "parallel", "arbitrary"),
            vmem_limit_bytes=int(min(vmem_cap, max(8 * per_block_bytes, 16 << 20))),
        ),
        cost_estimate=cost,
    )(t, f)

    # Combine split partial sums, then finalize on N scalars (cheap in XLA).
    sum_sq = jnp.sum(partial[:, :, 0], axis=0)            # (N,)
    psnr = 10.0 * jnp.log10(jnp.float32(D) / sum_sq)
    return jnp.mean(psnr)


def _loss_psnr_ref(im_true, im_fake, data_range=255.0):
    """Pure-JAX reference mirroring the PyTorch code, for verification."""
    N, C, H, W = im_true.shape
    it = jnp.clip(im_true.astype(jnp.float32), 0.0, 1.0) * data_range
    ifk = jnp.clip(im_fake.astype(jnp.float32), 0.0, 1.0) * data_range
    it = it.reshape(N, C * H * W)
    ifk = ifk.reshape(N, C * H * W)
    err = jnp.sum((it - ifk) ** 2, axis=1) / (C * H * W)
    psnr = 10.0 * jnp.log(data_range ** 2 / err) / math.log(10.0)
    return jnp.mean(psnr)


if __name__ == "__main__":
    key = jax.random.PRNGKey(0)
    k1, k2, k3, k4 = jax.random.split(key, 4)

    # Primary shape (N, C, H, W) = (2, 4, 16, 16); values partly outside
    # [0, 1] to exercise the clamp.
    im_true = jax.random.uniform(k1, (2, 4, 16, 16), jnp.float32, -0.2, 1.2)
    im_fake = jax.random.uniform(k2, (2, 4, 16, 16), jnp.float32, -0.2, 1.2)
    result = jax.block_until_ready(loss_psnr(im_true, im_fake, 255.0))
    expected = jax.block_until_ready(_loss_psnr_ref(im_true, im_fake, 255.0))
    assert jnp.allclose(result, expected, rtol=1e-4, atol=1e-4), (result, expected)

    # Secondary shape: N not a sublane multiple, D not a multiple of 128 ->
    # exercises partial row blocks and the in-kernel D-tail mask (no padding).
    t2 = jax.random.uniform(k3, (3, 3, 17, 19), jnp.float32, -0.2, 1.2)
    f2 = jax.random.uniform(k4, (3, 3, 17, 19), jnp.float32, -0.2, 1.2)
    r2 = jax.block_until_ready(loss_psnr(t2, f2, 255.0))
    e2 = jax.block_until_ready(_loss_psnr_ref(t2, f2, 255.0))
    assert jnp.allclose(r2, e2, rtol=1e-4, atol=1e-4), (r2, e2)

    print("KERNEL_OK")
</pallas_src>

<mosaic_0001>
module attributes {stable_mosaic.version = 11 : i64} {
  func.func @kernel(%arg0: i32, %arg1: i32, %arg2: i32, %arg3: memref<8x1024xf32, #tpu.memory_space<vmem>>, %arg4: memref<8x1024xf32, #tpu.memory_space<vmem>>, %arg5: memref<1x8x1xf32, #tpu.memory_space<vmem>>) attributes {dimension_semantics = [#tpu.dimension_semantics<parallel>, #tpu.dimension_semantics<parallel>, #tpu.dimension_semantics<arbitrary>], iteration_bounds = array<i64: 1, 1, 1>, scalar_prefetch = 0 : i64, scratch_operands = 0 : i64, tpu.core_type = #tpu.core_type<tc>, window_params = [{transform_indices = @transform_0, window_bounds = array<i64: 8, 1024>}, {transform_indices = @transform_1, window_bounds = array<i64: 8, 1024>}, {transform_indices = @transform_2, window_bounds = array<i64: 1, 8, 1>}]} {
    %c0_i32 = arith.constant 0 : i32
    %0 = arith.cmpi eq, %arg2, %c0_i32 : i32
    %1 = arith.extui %0 : i1 to i32
    %c0_i32_0 = arith.constant 0 : i32
    %2 = arith.cmpi ne, %1, %c0_i32_0 : i32
    scf.if %2 {
      %cst_14 = arith.constant 0.000000e+00 : f32
      %23 = vector.broadcast %cst_14 : f32 to vector<8x1xf32>
      %c0_15 = arith.constant 0 : index
      %c0_16 = arith.constant 0 : index
      %c0_17 = arith.constant 0 : index
      %24 = vector.load %arg5[%c0_15, %c0_16, %c0_17] : memref<1x8x1xf32, #tpu.memory_space<vmem>>, vector<1x8x1xf32>
      %25 = vector.shape_cast %24 : vector<1x8x1xf32> to vector<8x1xf32>
      %26 = vector.shape_cast %23 : vector<8x1xf32> to vector<1x8x1xf32>
      tpu.vector_store %arg5[%c0_15, %c0_16, %c0_17], %26 {strides = array<i32>} : memref<1x8x1xf32, #tpu.memory_space<vmem>>, vector<1x8x1xf32>,
    } else {
    }
    %c0 = arith.constant 0 : index
    %c0_1 = arith.constant 0 : index
    %3 = vector.load %arg3[%c0, %c0_1] : memref<8x1024xf32, #tpu.memory_space<vmem>>, vector<8x1024xf32>
    %cst = arith.constant 0.000000e+00 : f32
    %cst_2 = arith.constant 1.000000e+00 : f32
    %4 = vector.broadcast %cst : f32 to vector<8x1024xf32>
    %5 = arith.maximumf %4, %3 : vector<8x1024xf32>
    %6 = vector.broadcast %cst_2 : f32 to vector<8x1024xf32>
    %7 = arith.minimumf %6, %5 : vector<8x1024xf32>
    %c0_3 = arith.constant 0 : index
    %c0_4 = arith.constant 0 : index
    %8 = vector.load %arg4[%c0_3, %c0_4] : memref<8x1024xf32, #tpu.memory_space<vmem>>, vector<8x1024xf32>
    %cst_5 = arith.constant 0.000000e+00 : f32
    %cst_6 = arith.constant 1.000000e+00 : f32
    %9 = vector.broadcast %cst_5 : f32 to vector<8x1024xf32>
    %10 = arith.maximumf %9, %8 : vector<8x1024xf32>
    %11 = vector.broadcast %cst_6 : f32 to vector<8x1024xf32>
    %12 = arith.minimumf %11, %10 : vector<8x1024xf32>
    %13 = arith.subf %7, %12 : vector<8x1024xf32>
    %c0_7 = arith.constant 0 : index
    %c0_8 = arith.constant 0 : index
    %c0_9 = arith.constant 0 : index
    %14 = vector.load %arg5[%c0_7, %c0_8, %c0_9] : memref<1x8x1xf32, #tpu.memory_space<vmem>>, vector<1x8x1xf32>
    %15 = vector.shape_cast %14 : vector<1x8x1xf32> to vector<8x1xf32>
    %16 = arith.mulf %13, %13 : vector<8x1024xf32>
    %cst_10 = arith.constant dense<0.000000e+00> : vector<8xf32>
    %17 = vector.multi_reduction <add>, %16, %cst_10 [1] : vector<8x1024xf32> to vector<8xf32>
    %18 = vector.shape_cast %17 : vector<8xf32> to vector<8x1xf32>
    %19 = arith.addf %15, %18 : vector<8x1xf32>
    %c0_11 = arith.constant 0 : index
    %c0_12 = arith.constant 0 : index
    %c0_13 = arith.constant 0 : index
    %20 = vector.load %arg5[%c0_11, %c0_12, %c0_13] : memref<1x8x1xf32, #tpu.memory_space<vmem>>, vector<1x8x1xf32>
    %21 = vector.shape_cast %20 : vector<1x8x1xf32> to vector<8x1xf32>
    %22 = vector.shape_cast %19 : vector<8x1xf32> to vector<1x8x1xf32>
    tpu.vector_store %arg5[%c0_11, %c0_12, %c0_13], %22 {strides = array<i32>} : memref<1x8x1xf32, #tpu.memory_space<vmem>>, vector<1x8x1xf32>,
    return
  }
  func.func @transform_0(%arg0: i32, %arg1: i32, %arg2: i32) -> (i32, i32) {
    %c1_i32 = arith.constant 1 : i32
    %0 = arith.muli %arg0, %c1_i32 : i32
    %1 = arith.addi %0, %arg2 : i32
    %c0_i32 = arith.constant 0 : i32
    return %arg1, %1 : i32, i32
  }
  func.func @transform_1(%arg0: i32, %arg1: i32, %arg2: i32) -> (i32, i32) {
    %c1_i32 = arith.constant 1 : i32
    %0 = arith.muli %arg0, %c1_i32 : i32
    %1 = arith.addi %0, %arg2 : i32
    %c0_i32 = arith.constant 0 : i32
    return %arg1, %1 : i32, i32
  }
  func.func @transform_2(%arg0: i32, %arg1: i32, %arg2: i32) -> (i32, i32, i32) {
    %c0_i32 = arith.constant 0 : i32
    %c0_i32_0 = arith.constant 0 : i32
    return %arg0, %arg1, %c0_i32 : i32, i32, i32
  }
}

</mosaic_0001>

<bundles_post_ra>
// kernel: tpu_custom_call.1
= control target key start
LH: loop header
LB: loop body
LE: loop exit
PB: predicated region body
PF: predicated region fallthrough
CT: control target
= control target key end

     0   :  { %7 = vsyncpa [#allocation3], 0  ;;  %s308_s0 = inlined_call_operand.hbm [shape: f32[2,1024], index: 0, kind: input, shape index: {}]   ;;  %s309_s1 = inlined_call_operand.hbm [shape: f32[2,1024], index: 1, kind: input, shape index: {}]   ;;  %s310_s2 = inlined_call_operand.vmem [shape: f32[1,2,1], index: 2, kind: output, shape index: {}]  }
   0x1   :  { %8 = vsyncpa [#allocation5], 0 }
   0x2   :  { %14 = vsyncadd [#allocation3], 768  ;;  %s17_s11 = sshll.u32 %s308_s0, 4  ;;  %s277_s12 = smov [#allocation2]   ;;  %s18_s11 = int_to_ptr.hbm [resolvable:$true] %s17_s11 }
   0x3   :  { %s19_s13 = sshll.u32 %s277_s12, 4  ;;  %s278_s14 = smov 256   ;;  %s20_s13 = int_to_ptr.vmem [resolvable:$true] %s19_s13 }
   0x4   :  { %s279_s15 = smov 16  }
   0x5   :  { %25 = dma.hbm_to_vmem [thread:$0]  %s18_s11, 256, %s20_s13, [#allocation3], %s278_s14, %s278_s14, %s279_s15  }
   0x6   :  { %31 = vsyncadd [#allocation5], 768  ;;  %s34_s18 = sshll.u32 %s309_s1, 4  ;;  %s280_s19 = smov [#allocation4]   ;;  %s35_s18 = int_to_ptr.hbm [resolvable:$true] %s34_s18 }
   0x7   :  { %s36_s20 = sshll.u32 %s280_s19, 4  ;;  %s37_s20 = int_to_ptr.vmem [resolvable:$true] %s36_s20 }
   0x8   :  { %42 = dma.hbm_to_vmem [thread:$0]  %s35_s18, 256, %s37_s20, [#allocation5], %s278_s14, %s278_s14, %s279_s15  }
   0x9   :  { %273 = dma.done.wait [#allocation3], 1024  }
   0xa   :  { %274 = vsyncadd [#allocation3], 4294966272 }
   0xb   :  { %275 = dma.done.wait [#allocation5], 1024  }
   0xc   :  { %276 = vsyncadd [#allocation5], 4294966272  ;;  %v61_v0 = vld [vmem:[#allocation2] sm:$0xff]  ;;  %v62_v1 = vld [vmem:[#allocation2 + $0x8] sm:$0xff]  ;;  %vm59_vm0 = vcmask 7168  }
   0xd   :  { %v63_v2 = vld [vmem:[#allocation2 + $0x10] sm:$0xff]  ;;  %v64_v3 = vld [vmem:[#allocation2 + $0x18] sm:$0xff]  ;;  %v65_v4 = vld [vmem:[#allocation2 + $0x20] sm:$0xff]  ;;  %v69_v6 = vmax.f32 %v61_v0, 0.0  ;;  %v70_v7 = vmax.f32 %v62_v1, 0.0  ;;  %v281_v0 = vmov 0.0  }
   0xe   :  { %v66_v5 = vld [vmem:[#allocation2 + $0x28] sm:$0xff]  ;;  %v71_v8 = vmax.f32 %v63_v2, 0.0  ;;  %v67_v9 = vld [vmem:[#allocation2 + $0x30] sm:$0xff]  ;;  %v68_v10 = vld [vmem:[#allocation2 + $0x38] sm:$0xff]  ;;  %v72_v11 = vmax.f32 %v64_v3, 0.0  ;;  %v73_v12 = vmax.f32 %v65_v4, 0.0 }
   0xf   :  { %v74_v13 = vmax.f32 %v66_v5, 0.0  ;;  %v85_v14 = vld [vmem:[#allocation4] sm:$0xff]  ;;  %v75_v15 = vmax.f32 %v67_v9, 0.0  ;;  %v76_v16 = vmax.f32 %v68_v10, 0.0  ;;  %v77_v17 = vmin.f32 %v69_v6, 1.0  ;;  %v86_v19 = vld [vmem:[#allocation4 + $0x8] sm:$0xff] }
  0x10   :  { %v78_v18 = vmin.f32 %v70_v7, 1.0  ;;  %v87_v20 = vld [vmem:[#allocation4 + $0x10] sm:$0xff]  ;;  %v79_v21 = vmin.f32 %v71_v8, 1.0  ;;  %v80_v22 = vmin.f32 %v72_v11, 1.0  ;;  %v81_v23 = vmin.f32 %v73_v12, 1.0  ;;  %v88_v25 = vld [vmem:[#allocation4 + $0x18] sm:$0xff] }
  0x11   :  { %v82_v24 = vmin.f32 %v74_v13, 1.0  ;;  %v89_v26 = vld [vmem:[#allocation4 + $0x20] sm:$0xff]  ;;  %v83_v27 = vmin.f32 %v75_v15, 1.0  ;;  %v84_v28 = vmin.f32 %v76_v16, 1.0  ;;  %v90_v29 = vld [vmem:[#allocation4 + $0x28] sm:$0xff]  ;;  %v91_v30 = vld [vmem:[#allocation4 + $0x30] sm:$0xff] }
  0x12   :  { %v92_v31 = vld [vmem:[#allocation4 + $0x38] sm:$0xff]  ;;  %v93_v32 = vmax.f32 %v85_v14, 0.0  ;;  %v94_v33 = vmax.f32 %v86_v19, 0.0  ;;  %v95_v34 = vmax.f32 %v87_v20, 0.0  ;;  %v96_v35 = vmax.f32 %v88_v25, 0.0  ;;  %60 = vst.msk [vmem:[#allocation6] sm:$0xff] %vm59_vm0, %v281_v0 }
  0x13   :  { %v97_v36 = vmax.f32 %v89_v26, 0.0  ;;  %v98_v37 = vmax.f32 %v90_v29, 0.0  ;;  %v99_v38 = vmax.f32 %v91_v30, 0.0  ;;  %v100_v39 = vmax.f32 %v92_v31, 0.0 }
  0x14   :  { %v101_v40 = vmin.f32 %v93_v32, 1.0  ;;  %v102_v41 = vmin.f32 %v94_v33, 1.0  ;;  %v103_v42 = vmin.f32 %v95_v34, 1.0  ;;  %v104_v43 = vmin.f32 %v96_v35, 1.0 }
  0x15   :  { %v105_v44 = vmin.f32 %v97_v36, 1.0  ;;  %v106_v45 = vmin.f32 %v98_v37, 1.0  ;;  %v107_v46 = vmin.f32 %v99_v38, 1.0  ;;  %v108_v47 = vmin.f32 %v100_v39, 1.0 }
  0x16   :  { %v109_v48 = vsub.f32 %v77_v17, %v101_v40  ;;  %v110_v49 = vsub.f32 %v78_v18, %v102_v41  ;;  %v111_v50 = vsub.f32 %v79_v21, %v103_v42  ;;  %v112_v51 = vsub.f32 %v80_v22, %v104_v43 }
  0x17   :  { %v113_v52 = vsub.f32 %v81_v23, %v105_v44  ;;  %v114_v53 = vsub.f32 %v82_v24, %v106_v45  ;;  %v115_v54 = vsub.f32 %v83_v27, %v107_v46  ;;  %v116_v56 = vsub.f32 %v84_v28, %v108_v47 }
  0x18   :  { %v118_v55 = vmul.f32 %v109_v48, %v109_v48  ;;  %v120_v57 = vmul.f32 %v111_v50, %v111_v50  ;;  %v119_v59 = vmul.f32 %v110_v49, %v110_v49  ;;  %v121_v61 = vmul.f32 %v112_v51, %v112_v51 }
  0x19   :  { %v122_v58 = vmul.f32 %v113_v52, %v113_v52  ;;  %v124_v60 = vmul.f32 %v115_v54, %v115_v54  ;;  %v123_v62 = vmul.f32 %v114_v53, %v114_v53  ;;  %v125_v63 = vmul.f32 %v116_v56, %v116_v56  ;;  %v117_v16 = vld [vmem:[#allocation6] sm:$0xff] }
  0x1a   :  { %134 = vst [vmem:[#allocation1] ss:$4 sm:$0xff] %v118_v55 }
  0x1b   :  { %136 = vst [vmem:[#allocation1 + $0x1] ss:$4 sm:$0xff] %v120_v57 }
  0x1c   :  { %138 = vst [vmem:[#allocation1 + $0x2] ss:$4 sm:$0xff] %v122_v58 }
  0x1d   :  { %140 = vst [vmem:[#allocation1 + $0x3] ss:$4 sm:$0xff] %v124_v60 }
  0x1e   :  { %142 = vst [vmem:[#allocation1 + $0x20] ss:$4 sm:$0xff] %v119_v59 }
  0x1f   :  { %144 = vst [vmem:[#allocation1 + $0x21] ss:$4 sm:$0xff] %v121_v61 }
  0x20   :  { %146 = vst [vmem:[#allocation1 + $0x22] ss:$4 sm:$0xff] %v123_v62 }
  0x21   :  { %148 = vst [vmem:[#allocation1 + $0x23] ss:$4 sm:$0xff] %v125_v63 }
  0x24   :  { %v149_v1 = vld.sshfl [vmem:[#allocation1] sm:$0xff pattern:$0x73625140]  ;;  %v150_v2 = vld.sshfl [vmem:[#allocation1 + $0x8] sm:$0xff pattern:$0x73625140] }
  0x25   :  { %v151_v3 = vld.sshfl [vmem:[#allocation1 + $0x10] sm:$0xff pattern:$0x73625140]  ;;  %v165_v4 = vadd.f32 %v150_v2, %v149_v1  ;;  %v152_v5 = vld.sshfl [vmem:[#allocation1 + $0x18] sm:$0xff pattern:$0x73625140] }
  0x27   :  { %v166_v6 = vadd.f32 %v165_v4, %v151_v3 }
  0x28   :  { %v153_v7 = vld.sshfl [vmem:[#allocation1 + $0x20] sm:$0xff pattern:$0x73625140]  ;;  %v154_v9 = vld.sshfl [vmem:[#allocation1 + $0x28] sm:$0xff pattern:$0x73625140] }
  0x29   :  { %v167_v8 = vadd.f32 %v166_v6, %v152_v5  ;;  %v155_v11 = vld.sshfl [vmem:[#allocation1 + $0x30] sm:$0xff pattern:$0x73625140]  ;;  %v156_v13 = vld.sshfl [vmem:[#allocation1 + $0x38] sm:$0xff pattern:$0x73625140] }
  0x2b   :  { %v168_v10 = vadd.f32 %v167_v8, %v153_v7 }
  0x2d   :  { %v169_v12 = vadd.f32 %v168_v10, %v154_v9 }
  0x2f   :  { %v170_v14 = vadd.f32 %v169_v12, %v155_v11 }
  0x31   :  { %v171_v15 = vadd.f32 %v170_v14, %v156_v13 }
  0x33   :  { %172 = vadd.xlane.f32.xlu0 %v171_v15 }
  0xa6   :  { %v173_v17 = vpop.xlane.xlu0 %172 }
  0xa7   :  { %v174_v18 = vadd.f32 %v173_v17, %v117_v16 }
  0xa9   :  { %176 = vst.msk [vmem:[#allocation6] sm:$0xff] %vm59_vm0, %v174_v18 }
  0xb0   :  { %v195_v19 = vld [vmem:[#allocation6] sm:$0x3] }
  0xb1   :  { %196 = vst [vmem:[%s310_s2] sm:$0x3] %v195_v19 }
  0xb2   :  { %214 = vsyncpa [#allocation3], 1 }
  0xb3   :  { %215 = vsyncpa [#allocation5], 1 }

</bundles_post_ra>
